<compile_context>
chip_gen: v7x
topology: tpu7x:2x2x1
jax: 0.10.0
libtpu: 0.0.40
codegen_flags: <defaults>
</compile_context>

<pallas_src>
import math

import jax
import jax.numpy as jnp
from jax.experimental import pallas as pl
from jax.experimental.pallas import tpu as pltpu


def _round_up(x, m):
    return ((x + m - 1) // m) * m


def _pad2d(x, shape):
    pr = shape[0] - x.shape[0]
    pc = shape[1] - x.shape[1]
    if pr == 0 and pc == 0:
        return x
    return jnp.pad(x, ((0, pr), (0, pc)))


def _pick_tile(n_pad, candidates):
    for t in candidates:
        if t <= n_pad and n_pad % t == 0:
            return t
    return 128


def _default_vmem_limit():
    # Generation-aware budget: ~3/4 of per-core physical VMEM, capped at 100 MiB.
    #   v5e/v6e: 128 MiB -> 96 MiB        v7x: 64 MiB/TC -> 48 MiB
    try:
        cap = int(pltpu.get_tpu_info().vmem_capacity_bytes)
    except Exception:
        cap = 128 * 1024 * 1024
    return min((cap // 4) * 3, 100 * 1024 * 1024)


def _block_spec(shape, index_map, *, buffers=None):
    """BlockSpec with an optional buffer-count hint; graceful fallback if the
    installed JAX does not accept the pipeline_mode kwarg."""
    if buffers is not None:
        try:
            return pl.BlockSpec(shape, index_map, pipeline_mode=pl.Buffered(buffers))
        except TypeError:
            pass
    return pl.BlockSpec(shape, index_map)


# ----------------------------------------------------------------------------
# Stage 1: support = features @ weight   (bf16 MXU inputs, f32 accumulation)
# ----------------------------------------------------------------------------
def _support_kernel(feat_ref, w_ref, sup_ref):
    sup_ref[...] = jnp.dot(
        feat_ref[...], w_ref[...], preferred_element_type=jnp.float32
    ).astype(sup_ref.dtype)


# ----------------------------------------------------------------------------
# Stage 2: out = adj @ support (+ bias)   (grid = (row tiles, k reduction tiles))
# ----------------------------------------------------------------------------
def _make_aggregate_kernel(has_bias, support_resident, tile_k, acc_in_out,
                           compute_dtype):
    def kernel(*refs):
        it = iter(refs)
        adj_ref = next(it)
        sup_ref = next(it)
        b_ref = next(it) if has_bias else None
        out_ref = next(it)
        acc_ref = out_ref if acc_in_out else next(it)

        k = pl.program_id(1)

        @pl.when(k == 0)
        def _init():
            acc_ref[...] = jnp.zeros_like(acc_ref)

        if support_resident:
            # support is fully VMEM-resident; slice the k-th row block out of it.
            start = pl.multiple_of(k * tile_k, tile_k)
            sup_blk = sup_ref[pl.ds(start, tile_k), :]
        else:
            # support streamed per-k block via its BlockSpec.
            sup_blk = sup_ref[...]

        # adj arrives at its HBM source dtype; cast here (VPU slack under the MXU).
        adj_blk = adj_ref[...].astype(compute_dtype)
        acc_ref[...] += jnp.dot(adj_blk, sup_blk,
                                preferred_element_type=jnp.float32)

        @pl.when(k == pl.num_programs(1) - 1)
        def _finalize():
            res = acc_ref[...]
            if has_bias:
                res = res + b_ref[...]          # bias added exactly once
            out_ref[...] = res.astype(out_ref.dtype)

    return kernel


def graph_convolution(features, adj, weight, bias=None, *,
                      compute_dtype=jnp.bfloat16, vmem_limit_bytes=None):
    """Pallas GCN layer: adj @ (features @ weight) [+ bias]."""
    N, f_in = features.shape
    f_in_w, f_out = weight.shape
    assert f_in == f_in_w, "features / weight inner dims mismatch"
    assert adj.shape == (N, N), "adj must be square [N, N]"
    out_dtype = features.dtype

    # ---- lane-dense padded sizes & tiles ------------------------------------
    n_pad = _round_up(N, 128)
    f_in_pad = _round_up(f_in, 128)
    f_out_pad = _round_up(f_out, 128)
    tile1 = _pick_tile(n_pad, (1024, 512, 384, 256, 128))   # stage-1 row tile
    tile2 = _pick_tile(n_pad, (512, 384, 256, 128))         # stage-2 row & k tile

    if vmem_limit_bytes is None:
        vmem_limit_bytes = _default_vmem_limit()

    # Small operands: pad + cast in the wrapper (cheap relative to adj traffic).
    feat_p = _pad2d(features, (n_pad, f_in_pad)).astype(compute_dtype)
    w_p = _pad2d(weight, (f_in_pad, f_out_pad)).astype(compute_dtype)
    # Large operand: keep adj at its source dtype; pad only if N is ragged.
    adj_p = _pad2d(adj, (n_pad, n_pad))

    cd_size = jnp.dtype(compute_dtype).itemsize
    adj_size = jnp.dtype(adj_p.dtype).itemsize
    out_size = jnp.dtype(out_dtype).itemsize

    # ---- stage 1: support = X @ W -------------------------------------------
    support = pl.pallas_call(
        _support_kernel,
        out_shape=jax.ShapeDtypeStruct((n_pad, f_out_pad), compute_dtype),
        grid=(n_pad // tile1,),
        in_specs=[
            pl.BlockSpec((tile1, f_in_pad), lambda i: (i, 0)),          # streamed
            _block_spec((f_in_pad, f_out_pad), lambda i: (0, 0), buffers=1),  # resident
        ],
        out_specs=pl.BlockSpec((tile1, f_out_pad), lambda i: (i, 0)),
        compiler_params=pltpu.CompilerParams(
            dimension_semantics=("parallel",),
            vmem_limit_bytes=vmem_limit_bytes),
        cost_estimate=pl.CostEstimate(
            flops=2 * n_pad * f_in_pad * f_out_pad,
            transcendentals=0,
            bytes_accessed=(feat_p.size + w_p.size + n_pad * f_out_pad) * cd_size),
    )(feat_p, w_p)

    # ---- stage 2: out = adj @ support (+ bias) -------------------------------
    has_bias = bias is not None
    acc_in_out = jnp.dtype(out_dtype) == jnp.dtype(jnp.float32)

    # Explicit VMEM budget for the resident-support design (per core).
    streamed_bytes = (tile2 * tile2 * adj_size * 2           # adj, double-buffered
                      + tile2 * f_out_pad * out_size * 2     # out, double-buffered
                      + (0 if acc_in_out else tile2 * f_out_pad * 4)   # acc scratch
                      + (f_out_pad * 4 if has_bias else 0))  # bias, single-buffered
    resident_bytes = n_pad * f_out_pad * cd_size             # support, single-buffered
    support_resident = resident_bytes + streamed_bytes <= int(0.8 * vmem_limit_bytes)

    if support_resident:
        sup_spec = _block_spec((n_pad, f_out_pad), lambda i, k: (0, 0), buffers=1)
    else:
        # Fallback for large N (notably v7x's 64 MiB/TC): stream support per k block.
        sup_spec = pl.BlockSpec((tile2, f_out_pad), lambda i, k: (k, 0))

    in_specs = [
        pl.BlockSpec((tile2, tile2), lambda i, k: (i, k)),   # adj tile (streamed, src dtype)
        sup_spec,
    ]
    args = [adj_p, support]
    if has_bias:
        bias_p = _pad2d(bias.reshape(1, f_out).astype(jnp.float32), (1, f_out_pad))
        in_specs.append(_block_spec((1, f_out_pad), lambda i, k: (0, 0), buffers=1))
        args.append(bias_p)

    scratch_shapes = [] if acc_in_out else [pltpu.VMEM((tile2, f_out_pad), jnp.float32)]

    out_p = pl.pallas_call(
        _make_aggregate_kernel(has_bias, support_resident, tile2, acc_in_out,
                               compute_dtype),
        out_shape=jax.ShapeDtypeStruct((n_pad, f_out_pad), out_dtype),
        grid=(n_pad // tile2, n_pad // tile2),               # reduction axis last
        in_specs=in_specs,
        out_specs=pl.BlockSpec((tile2, f_out_pad), lambda i, k: (i, 0)),
        scratch_shapes=scratch_shapes,
        compiler_params=pltpu.CompilerParams(
            dimension_semantics=("parallel", "arbitrary"),
            vmem_limit_bytes=vmem_limit_bytes),
        cost_estimate=pl.CostEstimate(
            flops=2 * n_pad * n_pad * f_out_pad,
            transcendentals=0,
            bytes_accessed=adj_p.size * adj_size + support.size * cd_size
                           + n_pad * f_out_pad * out_size),
    )(*args)

    return out_p[:N, :f_out]


if __name__ == "__main__":
    # Small but tile- and padding-exercising shapes: 256 nodes, F_in=64 -> padded to
    # 128, F_out=96 -> padded to 128 then sliced back.
    N, in_features, out_features = 256, 64, 96

    key = jax.random.PRNGKey(0)
    k_feat, k_adj, k_w, k_b = jax.random.split(key, 4)

    # Deterministic init mirroring reset_parameters(): uniform(-stdv, stdv), stdv=1/sqrt(F_out).
    stdv = 1.0 / math.sqrt(out_features)
    weight = jax.random.uniform(k_w, (in_features, out_features),
                                minval=-stdv, maxval=stdv, dtype=jnp.float32)
    bias = jax.random.uniform(k_b, (out_features,),
                              minval=-stdv, maxval=stdv, dtype=jnp.float32)

    features = jax.random.normal(k_feat, (N, in_features), dtype=jnp.float32)
    a = jax.random.uniform(k_adj, (N, N), dtype=jnp.float32)
    adj = (a + a.T) / (2.0 * N)   # symmetric, roughly row-normalized dense adjacency

    out = graph_convolution(features, adj, weight, bias)
    out = jax.block_until_ready(out)
    assert out.shape == (N, out_features)

    # Matched-precision reference (bf16 MXU inputs, f32 accumulation) -> tight tolerance.
    cd = jnp.bfloat16
    sup_ref = jnp.dot(features.astype(cd), weight.astype(cd),
                      preferred_element_type=jnp.float32).astype(cd)
    ref = jnp.dot(adj.astype(cd), sup_ref,
                  preferred_element_type=jnp.float32) + bias[None, :]
    assert jnp.allclose(out, ref, atol=2e-3, rtol=2e-2), \
        float(jnp.max(jnp.abs(out - ref)))

    # Loose sanity check against pure-f32 math (covers bf16 quantization only).
    ref_f32 = adj @ (features @ weight) + bias[None, :]
    assert jnp.allclose(out, ref_f32, atol=5e-2, rtol=5e-2)

    # bias=None path (no bias operand streamed, no add executed).
    out_nb = graph_convolution(features, adj, weight, None)
    out_nb = jax.block_until_ready(out_nb)
    assert jnp.allclose(out_nb, ref - bias[None, :], atol=2e-3, rtol=2e-2)

    print("KERNEL_OK")
</pallas_src>

<mosaic_0001>
module attributes {stable_mosaic.version = 11 : i64} {
  func.func @_support_kernel(%arg0: i32, %arg1: memref<256x128xbf16, #tpu.memory_space<vmem>>, %arg2: memref<128x128xbf16, #tpu.memory_space<vmem>>, %arg3: memref<256x128xbf16, #tpu.memory_space<vmem>>) attributes {dimension_semantics = [#tpu.dimension_semantics<parallel>], iteration_bounds = array<i64: 1>, scalar_prefetch = 0 : i64, scratch_operands = 0 : i64, tpu.core_type = #tpu.core_type<tc>, window_params = [{transform_indices = @transform_0, window_bounds = array<i64: 256, 128>}, {pipeline_mode = #tpu.pipeline_mode<synchronous>, transform_indices = @transform_1, window_bounds = array<i64: 128, 128>}, {transform_indices = @transform_2, window_bounds = array<i64: 256, 128>}]} {
    %c0 = arith.constant 0 : index
    %c0_0 = arith.constant 0 : index
    %0 = vector.load %arg1[%c0, %c0_0] : memref<256x128xbf16, #tpu.memory_space<vmem>>, vector<256x128xbf16>
    %c0_1 = arith.constant 0 : index
    %c0_2 = arith.constant 0 : index
    %1 = vector.load %arg2[%c0_1, %c0_2] : memref<128x128xbf16, #tpu.memory_space<vmem>>, vector<128x128xbf16>
    %cst = arith.constant dense<0.000000e+00> : vector<256x128xf32>
    %2 = tpu.matmul %0, %1, %cst {dimension_numbers = #tpu.dot_dimension_numbers<[1], [0], [0], [1], [0, 0, 1, 1], [], []>} : vector<256x128xbf16>, vector<128x128xbf16>, vector<256x128xf32> -> vector<256x128xf32>
    %3 = arith.truncf %2 : vector<256x128xf32> to vector<256x128xbf16>
    %c0_3 = arith.constant 0 : index
    %c0_4 = arith.constant 0 : index
    %4 = vector.load %arg3[%c0_3, %c0_4] : memref<256x128xbf16, #tpu.memory_space<vmem>>, vector<256x128xbf16>
    tpu.vector_store %arg3[%c0_3, %c0_4], %3 {strides = array<i32>} : memref<256x128xbf16, #tpu.memory_space<vmem>>, vector<256x128xbf16>,
    return
  }
  func.func @transform_0(%arg0: i32) -> (i32, i32) {
    %c0_i32 = arith.constant 0 : i32
    %c0_i32_0 = arith.constant 0 : i32
    return %arg0, %c0_i32 : i32, i32
  }
  func.func @transform_1(%arg0: i32) -> (i32, i32) {
    %c0_i32 = arith.constant 0 : i32
    %c0_i32_0 = arith.constant 0 : i32
    %c0_i32_1 = arith.constant 0 : i32
    return %c0_i32, %c0_i32_0 : i32, i32
  }
  func.func @transform_2(%arg0: i32) -> (i32, i32) {
    %c0_i32 = arith.constant 0 : i32
    %c0_i32_0 = arith.constant 0 : i32
    return %arg0, %c0_i32 : i32, i32
  }
}

</mosaic_0001>

<bundles_post_ra>
// kernel: tpu_custom_call.1
= control target key start
LH: loop header
LB: loop body
LE: loop exit
PB: predicated region body
PF: predicated region fallthrough
CT: control target
= control target key end

     0   :  { %7 = vsyncpa [#allocation3], 0  ;;  %s1009_s0 = inlined_call_operand.hbm [shape: bf16[256,128], index: 0, kind: input, shape index: {}]   ;;  %s1010_s1 = inlined_call_operand.hbm [shape: bf16[128,128], index: 1, kind: input, shape index: {}]   ;;  %s1011_s2 = inlined_call_operand.hbm [shape: bf16[256,128], index: 2, kind: output, shape index: {}]  }
   0x1   :  { %8 = vsyncpa [#allocation6], 0 }
   0x2   :  { %9 = vsyncpa [#allocation4], 0  ;;  %s944_s9 = smov [#allocation2]   ;;  %s872_s13 = scalar_lea.hbm %s1009_s0, 2048 }
   0x3   :  { %s15_s10 = sshll.u32 %s944_s9, 4  ;;  %p873_p0 = scmp.ne.s32.totalorder %s1009_s0, %s872_s13  ;;  %s16_s10 = int_to_ptr.vmem [resolvable:$true] %s15_s10 }
   0x4   :  { %p876_p1 = scmp.lt.u32.totalorder %s872_s13, %s1009_s0 }
   0x6   :  { %p878_p2 = pnand %p876_p1, %p873_p0 }
   0x8   :  { %881 = shalt.err (!%p878_p2)
}
   0x9   :  { %s882_s18 = scalar_lea.vmem %s16_s10, 2048  ;;  %p887_p4 = scmp.lt.s32.totalorder %s16_s10, %s16_s10 }
   0xa   :  { %p883_p3 = scmp.ne.s32.totalorder %s16_s10, %s882_s18  ;;  %p888_p5 = scmp.lt.s32.totalorder %s882_s18, %s882_s18 }
   0xc   :  { %p889_p6 = por %p888_p5, %p887_p4 }
   0xe   :  { %p890_p7 = pnand %p889_p6, %p883_p3 }
  0x10   :  { %893 = shalt.err (!%p890_p7)
}
  0x11   :  { %s945_s19 = smov 64   ;;  %s946_s20 = smov 4  }
  0x12   :  { %21 = dma.hbm_to_vmem [thread:$0]  %s1009_s0, 2048, %s16_s10, [#allocation3], %s945_s19, %s945_s19, %s946_s20  }
  0x13   :  { %s947_s23 = smov [#allocation5]   ;;  %s894_s27 = scalar_lea.hbm %s1010_s1, 1024 }
  0x14   :  { %s27_s24 = sshll.u32 %s947_s23, 4  ;;  %p895_p8 = scmp.ne.s32.totalorder %s1010_s1, %s894_s27  ;;  %s28_s24 = int_to_ptr.vmem [resolvable:$true] %s27_s24 }
  0x15   :  { %p898_p9 = scmp.lt.u32.totalorder %s894_s27, %s1010_s1 }
  0x17   :  { %p900_p10 = pnand %p898_p9, %p895_p8 }
  0x19   :  { %903 = shalt.err (!%p900_p10)
}
  0x1a   :  { %s904_s4 = scalar_lea.vmem %s28_s24, 1024  ;;  %p909_p12 = scmp.lt.s32.totalorder %s28_s24, %s28_s24 }
  0x1b   :  { %p905_p11 = scmp.ne.s32.totalorder %s28_s24, %s904_s4  ;;  %p910_p13 = scmp.lt.s32.totalorder %s904_s4, %s904_s4 }
  0x1d   :  { %p911_p0 = por %p910_p13, %p909_p12 }
  0x1f   :  { %p912_p1 = pnand %p911_p0, %p905_p11 }
  0x21   :  { %915 = shalt.err (!%p912_p1)
}
  0x22   :  { %33 = dma.hbm_to_vmem [thread:$0]  %s1010_s1, 1024, %s28_s24, [#allocation6], %s945_s19, %s945_s19, %s946_s20  }
  0x23   :  { %938 = dma.done.wait [#allocation3], 2048  }
  0x24   :  { %939 = vsyncadd [#allocation3], 4294965248 }
  0x25   :  { %940 = dma.done.wait [#allocation6], 1024  }
  0x26   :  { %941 = vsyncadd [#allocation6], 4294966272  ;;  %v848_v0 = vld [vmem:[#allocation5] sm:$0xff]   ;;  %v849_v1 = vld [vmem:[#allocation5 + $0x8] sm:$0xff]   ;;  %s948_s1 = smov [#allocation7]  }
  0x27   :  { %779 = vmatprep.subr.bf16.mxu0 %v848_v0  ;;  %827 = vmatprep.subr.bf16.mxu1 %v848_v0  ;;  %v850_v2 = vld [vmem:[#allocation5 + $0x10] sm:$0xff]   ;;  %v851_v3 = vld [vmem:[#allocation5 + $0x18] sm:$0xff]   ;;  %v856_v4 = vld [vmem:[#allocation2] sm:$0xff]   ;;  %s559_s6 = sshll.u32 %s948_s1, 4  ;;  %s560_s6 = int_to_ptr.vmem [resolvable:$true] %s559_s6 }
  0x28   :  { %780 = vmatpush3.bf16.msra.mxu0 %v848_v0  ;;  %835 = vmatpush3.bf16.msra.mxu1 %v848_v0  ;;  %v857_v5 = vld [vmem:[#allocation2 + $0x40] sm:$0xff]   ;;  %v853_v7 = vld [vmem:[#allocation5 + $0x28] sm:$0xff]   ;;  %v854_v8 = vld [vmem:[#allocation5 + $0x30] sm:$0xff]   ;;  %s916_s7 = scalar_lea.vmem %s560_s6, 2048  ;;  %p921_p3 = scmp.lt.s32.totalorder %s560_s6, %s560_s6 }
  0x29   :  { %781 = vmatprep.subr.bf16.mxu0 %v849_v1  ;;  %828 = vmatprep.subr.bf16.mxu1 %v849_v1  ;;  %v852_v6 = vld [vmem:[#allocation5 + $0x20] sm:$0xff]   ;;  %v855_v9 = vld [vmem:[#allocation5 + $0x38] sm:$0xff]   ;;  %v858_v10 = vld [vmem:[#allocation2 + $0x8] sm:$0xff]   ;;  %p917_p2 = scmp.ne.s32.totalorder %s560_s6, %s916_s7  ;;  %p922_p4 = scmp.lt.s32.totalorder %s916_s7, %s916_s7 }
  0x2a   :  { %795 = vmatprep.mubr.bf16.mxu0 %v856_v4  ;;  %811 = vmatprep.mubr.bf16.mxu1 %v857_v5  ;;  %v859_v11 = vld [vmem:[#allocation2 + $0x48] sm:$0xff]   ;;  %v860_v12 = vld [vmem:[#allocation2 + $0x10] sm:$0xff]   ;;  %v862_v14 = vld [vmem:[#allocation2 + $0x18] sm:$0xff]  }
  0x2b   :  { %v861_v13 = vld [vmem:[#allocation2 + $0x50] sm:$0xff]   ;;  %v863_v15 = vld [vmem:[#allocation2 + $0x58] sm:$0xff]   ;;  %v864_v16 = vld [vmem:[#allocation2 + $0x20] sm:$0xff]   ;;  %p923_p5 = por %p922_p4, %p921_p3 }
  0x2c   :  { %782 = vmatpush3.bf16.msra.mxu0 %v849_v1  ;;  %836 = vmatpush3.bf16.msra.mxu1 %v849_v1  ;;  %v865_v17 = vld [vmem:[#allocation2 + $0x60] sm:$0xff]   ;;  %v866_v18 = vld [vmem:[#allocation2 + $0x28] sm:$0xff]   ;;  %v868_v20 = vld [vmem:[#allocation2 + $0x30] sm:$0xff]  }
  0x2d   :  { %783 = vmatprep.subr.bf16.mxu0 %v850_v2  ;;  %829 = vmatprep.subr.bf16.mxu1 %v850_v2  ;;  %v867_v19 = vld [vmem:[#allocation2 + $0x68] sm:$0xff]   ;;  %v869_v21 = vld [vmem:[#allocation2 + $0x70] sm:$0xff]   ;;  %v870_v22 = vld [vmem:[#allocation2 + $0x38] sm:$0xff]   ;;  %p924_p6 = pnand %p923_p5, %p917_p2 }
  0x2e   :  { %v871_v23 = vld [vmem:[#allocation2 + $0x78] sm:$0xff]  }
  0x30   :  { %784 = vmatpush3.bf16.msra.mxu0 %v850_v2  ;;  %837 = vmatpush3.bf16.msra.mxu1 %v850_v2 }
  0x31   :  { %785 = vmatprep.subr.bf16.mxu0 %v851_v3  ;;  %830 = vmatprep.subr.bf16.mxu1 %v851_v3 }
  0x34   :  { %786 = vmatpush3.bf16.msra.mxu0 %v851_v3  ;;  %838 = vmatpush3.bf16.msra.mxu1 %v851_v3 }
  0x35   :  { %787 = vmatprep.subr.bf16.mxu0 %v852_v6  ;;  %831 = vmatprep.subr.bf16.mxu1 %v852_v6 }
  0x38   :  { %788 = vmatpush3.bf16.msra.mxu0 %v852_v6  ;;  %839 = vmatpush3.bf16.msra.mxu1 %v852_v6 }
  0x39   :  { %789 = vmatprep.subr.bf16.mxu0 %v853_v7  ;;  %832 = vmatprep.subr.bf16.mxu1 %v853_v7 }
  0x3c   :  { %790 = vmatpush3.bf16.msra.mxu0 %v853_v7  ;;  %840 = vmatpush3.bf16.msra.mxu1 %v853_v7 }
  0x3d   :  { %791 = vmatprep.subr.bf16.mxu0 %v854_v8  ;;  %833 = vmatprep.subr.bf16.mxu1 %v854_v8 }
  0x40   :  { %792 = vmatpush3.bf16.msra.mxu0 %v854_v8  ;;  %841 = vmatpush3.bf16.msra.mxu1 %v854_v8 }
  0x41   :  { %793 = vmatprep.subr.bf16.mxu0 %v855_v9  ;;  %834 = vmatprep.subr.bf16.mxu1 %v855_v9 }
  0x44   :  { %794 = vmatpush3.bf16.msra.mxu0 %v855_v9  ;;  %842 = vmatpush3.bf16.msra.mxu1 %v855_v9 }
  0x47   :  { %796 = vmatmul.mubr.bf16.vlgmr.msra.gmra.mrb[0].mxu0 %v858_v10  ;;  %812 = vmatmul.mubr.bf16.vlgmr.msra.gmra.mrb[0].mxu1 %v859_v11 }
  0x48   :  { %799 = vmatprep.mubr.bf16.mxu0 %v860_v12  ;;  %815 = vmatprep.mubr.bf16.mxu1 %v861_v13 }
  0x4f   :  { %800 = vmatmul.mubr.bf16.gmra.mrb[4].mxu0 %v862_v14  ;;  %816 = vmatmul.mubr.bf16.gmra.mrb[4].mxu1 %v863_v15 }
  0x50   :  { %803 = vmatprep.mubr.bf16.mxu0 %v864_v16  ;;  %819 = vmatprep.mubr.bf16.mxu1 %v865_v17 }
  0x57   :  { %804 = vmatmul.mubr.bf16.gmra.mrb[8].mxu0 %v866_v18  ;;  %820 = vmatmul.mubr.bf16.gmra.mrb[8].mxu1 %v867_v19 }
  0x58   :  { %807 = vmatprep.mubr.bf16.mxu0 %v868_v20  ;;  %823 = vmatprep.mubr.bf16.mxu1 %v869_v21 }
  0x5f   :  { %808 = vmatmul.mubr.bf16.gmra.mrb[12].mxu0 %v870_v22  ;;  %824 = vmatmul.mubr.bf16.gmra.mrb[12].mxu1 %v871_v23 }
 0x11a   :  { %v797_v24 = vpop.f32.mrb[0].mxu0  ;;  %v813_v25 = vpop.f32.mrb[0].mxu1 }
 0x11b   :  { %v267_v26 = vpop.f32.mrb[1].mxu0  ;;  %v331_v27 = vpop.f32.mrb[1].mxu1 }
 0x11c   :  { %v798_v28 = vpop.f32.mrb[2].mxu0  ;;  %v814_v29 = vpop.f32.mrb[2].mxu1 }
 0x11d   :  { %v668_v30 = vpack.c.bf16 %v798_v28, %v797_v24  ;;  %v708_v31 = vpack.c.bf16 %v814_v29, %v813_v25  ;;  %v270_v32 = vpop.f32.mrb[3].mxu0  ;;  %v334_v33 = vpop.f32.mrb[3].mxu1 }
 0x11e   :  { %v663_v34 = vpack.c.bf16 %v270_v32, %v267_v26  ;;  %v703_v35 = vpack.c.bf16 %v334_v33, %v331_v27 }
 0x11f   :  { %740 = vst [vmem:[#allocation7 + $0x8] sm:$0xff] %v668_v30   ;;  %748 = vst [vmem:[#allocation7 + $0x48] sm:$0xff] %v708_v31  }
 0x120   :  { %664 = vst [vmem:[#allocation7] sm:$0xff] %v663_v34   ;;  %747 = vst [vmem:[#allocation7 + $0x40] sm:$0xff] %v703_v35  }
 0x122   :  { %v801_v36 = vpop.f32.mrb[4].mxu0  ;;  %v817_v37 = vpop.f32.mrb[4].mxu1 }
 0x123   :  { %v283_v38 = vpop.f32.mrb[5].mxu0  ;;  %v347_v39 = vpop.f32.mrb[5].mxu1 }
 0x124   :  { %v802_v40 = vpop.f32.mrb[6].mxu0  ;;  %v818_v41 = vpop.f32.mrb[6].mxu1 }
 0x125   :  { %v678_v42 = vpack.c.bf16 %v802_v40, %v801_v36  ;;  %v718_v43 = vpack.c.bf16 %v818_v41, %v817_v37  ;;  %v286_v44 = vpop.f32.mrb[7].mxu0  ;;  %v350_v45 = vpop.f32.mrb[7].mxu1 }
 0x126   :  { %v673_v46 = vpack.c.bf16 %v286_v44, %v283_v38  ;;  %v713_v47 = vpack.c.bf16 %v350_v45, %v347_v39 }
 0x127   :  { %742 = vst [vmem:[#allocation7 + $0x18] sm:$0xff] %v678_v42   ;;  %750 = vst [vmem:[#allocation7 + $0x58] sm:$0xff] %v718_v43  }
 0x128   :  { %741 = vst [vmem:[#allocation7 + $0x10] sm:$0xff] %v673_v46   ;;  %749 = vst [vmem:[#allocation7 + $0x50] sm:$0xff] %v713_v47  }
 0x12a   :  { %v805_v48 = vpop.f32.mrb[8].mxu0  ;;  %v821_v49 = vpop.f32.mrb[8].mxu1 }
 0x12b   :  { %v299_v50 = vpop.f32.mrb[9].mxu0  ;;  %v363_v51 = vpop.f32.mrb[9].mxu1 }
 0x12c   :  { %v806_v52 = vpop.f32.mrb[10].mxu0  ;;  %v822_v53 = vpop.f32.mrb[10].mxu1 }
 0x12d   :  { %v688_v54 = vpack.c.bf16 %v806_v52, %v805_v48  ;;  %v728_v55 = vpack.c.bf16 %v822_v53, %v821_v49  ;;  %v302_v56 = vpop.f32.mrb[11].mxu0  ;;  %v366_v57 = vpop.f32.mrb[11].mxu1 }
 0x12e   :  { %v683_v58 = vpack.c.bf16 %v302_v56, %v299_v50  ;;  %v723_v59 = vpack.c.bf16 %v366_v57, %v363_v51 }
 0x12f   :  { %744 = vst [vmem:[#allocation7 + $0x28] sm:$0xff] %v688_v54   ;;  %752 = vst [vmem:[#allocation7 + $0x68] sm:$0xff] %v728_v55  }
 0x130   :  { %743 = vst [vmem:[#allocation7 + $0x20] sm:$0xff] %v683_v58   ;;  %751 = vst [vmem:[#allocation7 + $0x60] sm:$0xff] %v723_v59  }
 0x132   :  { %v809_v60 = vpop.f32.mrb[12].mxu0  ;;  %v825_v61 = vpop.f32.mrb[12].mxu1 }
 0x133   :  { %v315_v62 = vpop.f32.mrb[13].mxu0  ;;  %v379_v63 = vpop.f32.mrb[13].mxu1 }
 0x134   :  { %v810_v0 = vpop.f32.mrb[14].mxu0  ;;  %v826_v1 = vpop.f32.mrb[14].mxu1 }
 0x135   :  { %v698_v2 = vpack.c.bf16 %v810_v0, %v809_v60  ;;  %v738_v3 = vpack.c.bf16 %v826_v1, %v825_v61  ;;  %v318_v4 = vpop.f32.mrb[15].mxu0  ;;  %v382_v5 = vpop.f32.mrb[15].mxu1 }
 0x136   :  { %v693_v6 = vpack.c.bf16 %v318_v4, %v315_v62  ;;  %v733_v7 = vpack.c.bf16 %v382_v5, %v379_v63 }
 0x137   :  { %746 = vst [vmem:[#allocation7 + $0x38] sm:$0xff] %v698_v2   ;;  %754 = vst [vmem:[#allocation7 + $0x78] sm:$0xff] %v738_v3  }
 0x138   :  { %745 = vst [vmem:[#allocation7 + $0x30] sm:$0xff] %v693_v6   ;;  %753 = vst [vmem:[#allocation7 + $0x70] sm:$0xff] %v733_v7  }
 0x139   :  { %927 = shalt.err (!%p924_p6)
}
 0x13a   :  { %s928_s10 = scalar_lea.hbm %s1011_s2, 2048 }
 0x13b   :  { %p929_p7 = scmp.ne.s32.totalorder %s1011_s2, %s928_s10  ;;  %p932_p8 = scmp.lt.u32.totalorder %s928_s10, %s1011_s2 }
 0x13d   :  { %p934_p9 = pnand %p932_p8, %p929_p7 }
 0x13f   :  { %937 = shalt.err (!%p934_p9)
}
 0x140   :  { %565 = dma.vmem_to_hbm [thread:$0]  %s560_s6, 2048, %s1011_s2, [#allocation4], %s945_s19, %s945_s19, %s946_s20  }
 0x141   :  { %942 = dma.done.wait [#allocation4], 2048  }
 0x142   :  { %943 = vsyncadd [#allocation4], 4294965248 }
 0x143   :  { %569 = vsyncpa [#allocation3], 1 }
 0x144   :  { %570 = vsyncpa [#allocation6], 1 }
 0x145   :  { %571 = vsyncpa [#allocation4], 1 }

</bundles_post_ra>
